<compile_context>
chip_gen: v7x
topology: tpu7x:2x2x1
jax: 0.10.0
libtpu: 0.0.40
codegen_flags: <defaults>
</compile_context>

<pallas_src>
import functools

import jax
import jax.numpy as jnp
from jax.experimental import pallas as pl
from jax.experimental.pallas import tpu as pltpu

LANE = 128
SUBLANE = 8


def vae_kernel(
    x_ref, eps_ref,
    w1_ref, b1_ref,        # img2hidden            [in_p,  h_p]
    wms_ref, bms_ref,      # fused hidden2(mu|sig) [h_p, 2*z_p]
    w2_ref, b2_ref,        # z2hid                 [z_p,  h_p]
    w3_ref, b3_ref,        # hid2img               [h_p, in_p]
    xrec_ref, musig_ref,
):
    cdt = w1_ref.dtype                      # matmul operand dtype (f32 or bf16)
    z_p = eps_ref.shape[-1]

    x = x_ref[...]

    # ---- encode ----
    h = jnp.dot(x.astype(cdt), w1_ref[...],
                preferred_element_type=jnp.float32) + b1_ref[...]
    h = jnp.maximum(h, 0.0)                 # ReLU (f32 on the VPU)

    # fused mu|sigma head: one matmul, one lane-dense store
    musig = jnp.dot(h.astype(cdt), wms_ref[...],
                    preferred_element_type=jnp.float32) + bms_ref[...]
    mu = musig[:, :z_p]
    sigma = musig[:, z_p:]

    # ---- reparameterize: z = mu + sigma * eps ----
    z = mu + sigma * eps_ref[...]

    # ---- decode ----
    h2 = jnp.dot(z.astype(cdt), w2_ref[...],
                 preferred_element_type=jnp.float32) + b2_ref[...]
    h2 = jnp.maximum(h2, 0.0)               # ReLU
    logits = jnp.dot(h2.astype(cdt), w3_ref[...],
                     preferred_element_type=jnp.float32) + b3_ref[...]

    xrec_ref[...] = jax.nn.sigmoid(logits)  # sigmoid on the EUP, f32
    musig_ref[...] = musig


def _round_up(n, m):
    return ((n + m - 1) // m) * m


def _pad2d(a, rows, cols):
    return jnp.pad(a, ((0, rows - a.shape[0]), (0, cols - a.shape[1])))


def init_linear(key, in_features, out_features):
    """Deterministic PyTorch-style init; weight stored as [in, out]."""
    kw, kb = jax.random.split(key)
    bound = 1.0 / jnp.sqrt(jnp.float32(in_features))
    w = jax.random.uniform(kw, (in_features, out_features), jnp.float32, -bound, bound)
    b = jax.random.uniform(kb, (1, out_features), jnp.float32, -bound, bound)
    return w, b


@functools.partial(jax.jit, static_argnames=("batch_tile", "weight_dtype"))
def vae_forward(x, eps, params, *, batch_tile=256, weight_dtype=jnp.float32):
    B, input_dim = x.shape
    h_dim = params["w1"].shape[1]
    z_dim = params["wmu"].shape[1]

    # lane-dense padded feature dims
    in_p = _round_up(input_dim, LANE)
    h_p = _round_up(h_dim, LANE)
    z_p = _round_up(z_dim, LANE)

    # batch tile: multiple of 8 sublanes, capped for VMEM (v7x: 64 MiB total)
    tb = min(batch_tile, _round_up(B, SUBLANE))
    B_p = _round_up(B, tb)

    # pad streamed arrays (zero padding is semantics-preserving: padded weight
    # rows/cols and bias entries are zero, padded outputs are sliced off)
    x_p = jnp.pad(x, ((0, B_p - B), (0, in_p - input_dim)))
    eps_p = jnp.pad(eps, ((0, B_p - B), (0, z_p - z_dim)))

    # pad (+ optionally cast) weights; fuse mu|sigma head. Biases stay f32.
    w1 = _pad2d(params["w1"], in_p, h_p).astype(weight_dtype)
    b1 = _pad2d(params["b1"], 1, h_p)
    wms = jnp.concatenate(
        [_pad2d(params["wmu"], h_p, z_p), _pad2d(params["wsig"], h_p, z_p)],
        axis=1).astype(weight_dtype)
    bms = jnp.concatenate(
        [_pad2d(params["bmu"], 1, z_p), _pad2d(params["bsig"], 1, z_p)], axis=1)
    w2 = _pad2d(params["w2"], z_p, h_p).astype(weight_dtype)
    b2 = _pad2d(params["b2"], 1, h_p)
    w3 = _pad2d(params["w3"], h_p, in_p).astype(weight_dtype)
    b3 = _pad2d(params["b3"], 1, in_p)

    batch_map = lambda i: (i, 0)   # noqa: E731
    fixed_map = lambda i: (0, 0)   # noqa: E731

    in_specs = [
        pl.BlockSpec((tb, in_p), batch_map),       # x
        pl.BlockSpec((tb, z_p), batch_map),        # eps
        pl.BlockSpec((in_p, h_p), fixed_map),      # w1
        pl.BlockSpec((1, h_p), fixed_map),         # b1
        pl.BlockSpec((h_p, 2 * z_p), fixed_map),   # wms (mu|sigma fused)
        pl.BlockSpec((1, 2 * z_p), fixed_map),     # bms
        pl.BlockSpec((z_p, h_p), fixed_map),       # w2
        pl.BlockSpec((1, h_p), fixed_map),         # b2
        pl.BlockSpec((h_p, in_p), fixed_map),      # w3
        pl.BlockSpec((1, in_p), fixed_map),        # b3
    ]
    out_specs = (
        pl.BlockSpec((tb, in_p), batch_map),       # x_recon (padded)
        pl.BlockSpec((tb, 2 * z_p), batch_map),    # mu|sigma fused (padded)
    )

    wbytes = 4 if weight_dtype == jnp.float32 else 2
    flops = 2 * B_p * (in_p * h_p + h_p * 2 * z_p + z_p * h_p + h_p * in_p)
    bytes_accessed = (
        4 * (x_p.size + eps_p.size + B_p * in_p + B_p * 2 * z_p)
        + wbytes * (w1.size + wms.size + w2.size + w3.size)
        + 4 * (b1.size + bms.size + b2.size + b3.size)
    )
    cost = pl.CostEstimate(flops=flops,
                           transcendentals=B_p * in_p,   # sigmoid
                           bytes_accessed=bytes_accessed)

    xrec_p, musig_p = pl.pallas_call(
        vae_kernel,
        out_shape=(
            jax.ShapeDtypeStruct((B_p, in_p), jnp.float32),
            jax.ShapeDtypeStruct((B_p, 2 * z_p), jnp.float32),
        ),
        grid=(B_p // tb,),
        in_specs=in_specs,
        out_specs=out_specs,
        compiler_params=pltpu.CompilerParams(
            dimension_semantics=("parallel",),   # shard batch tiles across TCs
        ),
        cost_estimate=cost,
    )(x_p, eps_p, w1, b1, wms, bms, w2, b2, w3, b3)

    # slice padding off and split the fused mu|sigma output
    x_recon = xrec_p[:B, :input_dim]
    mu = musig_p[:B, :z_dim]
    sigma = musig_p[:B, z_p:z_p + z_dim]
    return x_recon, mu, sigma


if __name__ == "__main__":
    # Small shapes consistent with the module: flattened image -> hidden -> z.
    B, input_dim, h_dim, z_dim = 8, 64, 32, 16

    root = jax.random.PRNGKey(0)
    kx, keps, k1, k2, k3, k4, k5 = jax.random.split(root, 7)

    x = jax.random.uniform(kx, (B, input_dim), jnp.float32)   # image-like input
    eps = jax.random.normal(keps, (B, z_dim), jnp.float32)    # torch.randn_like(sigma)

    w1, b1 = init_linear(k1, input_dim, h_dim)     # img2hidden
    wmu, bmu = init_linear(k2, h_dim, z_dim)       # hidden2mu
    wsig, bsig = init_linear(k3, h_dim, z_dim)     # hidden2sigma
    w2, b2 = init_linear(k4, z_dim, h_dim)         # z2hid
    w3, b3 = init_linear(k5, h_dim, input_dim)     # hid2img

    params = dict(w1=w1, b1=b1, wmu=wmu, bmu=bmu, wsig=wsig, bsig=bsig,
                  w2=w2, b2=b2, w3=w3, b3=b3)

    # ---- f32 path ----
    x_recon, mu, sigma = vae_forward(x, eps, params)
    jax.block_until_ready((x_recon, mu, sigma))

    # pure-JAX reference
    h_ref = jnp.maximum(x @ w1 + b1, 0.0)
    mu_ref = h_ref @ wmu + bmu
    sig_ref = h_ref @ wsig + bsig
    z_ref = mu_ref + sig_ref * eps
    h2_ref = jnp.maximum(z_ref @ w2 + b2, 0.0)
    xr_ref = jax.nn.sigmoid(h2_ref @ w3 + b3)

    assert x_recon.shape == (B, input_dim) and mu.shape == (B, z_dim)
    assert jnp.allclose(x_recon, xr_ref, atol=1e-5)
    assert jnp.allclose(mu, mu_ref, atol=1e-5)
    assert jnp.allclose(sigma, sig_ref, atol=1e-5)

    # ---- bf16-weight path (MXU-friendly on v5e/v6e), f32 accumulation ----
    x_recon_bf, mu_bf, sigma_bf = vae_forward(x, eps, params,
                                              weight_dtype=jnp.bfloat16)
    jax.block_until_ready((x_recon_bf, mu_bf, sigma_bf))
    assert jnp.allclose(x_recon_bf, xr_ref, atol=1e-1)
    assert jnp.allclose(mu_bf, mu_ref, atol=1e-1)
    assert jnp.allclose(sigma_bf, sig_ref, atol=1e-1)

    print("KERNEL_OK")
</pallas_src>

<mosaic_0001>
module attributes {stable_mosaic.version = 11 : i64} {
  func.func @vae_kernel(%arg0: i32, %arg1: memref<8x128xf32, #tpu.memory_space<vmem>>, %arg2: memref<8x128xf32, #tpu.memory_space<vmem>>, %arg3: memref<128x128xf32, #tpu.memory_space<vmem>>, %arg4: memref<1x128xf32, #tpu.memory_space<vmem>>, %arg5: memref<128x256xf32, #tpu.memory_space<vmem>>, %arg6: memref<1x256xf32, #tpu.memory_space<vmem>>, %arg7: memref<128x128xf32, #tpu.memory_space<vmem>>, %arg8: memref<1x128xf32, #tpu.memory_space<vmem>>, %arg9: memref<128x128xf32, #tpu.memory_space<vmem>>, %arg10: memref<1x128xf32, #tpu.memory_space<vmem>>, %arg11: memref<8x128xf32, #tpu.memory_space<vmem>>, %arg12: memref<8x256xf32, #tpu.memory_space<vmem>>) attributes {dimension_semantics = [#tpu.dimension_semantics<parallel>], iteration_bounds = array<i64: 1>, scalar_prefetch = 0 : i64, scratch_operands = 0 : i64, tpu.core_type = #tpu.core_type<tc>, window_params = [{transform_indices = @transform_0, window_bounds = array<i64: 8, 128>}, {transform_indices = @transform_1, window_bounds = array<i64: 8, 128>}, {pipeline_mode = #tpu.pipeline_mode<synchronous>, transform_indices = @transform_2, window_bounds = array<i64: 128, 128>}, {pipeline_mode = #tpu.pipeline_mode<synchronous>, transform_indices = @transform_3, window_bounds = array<i64: 1, 128>}, {pipeline_mode = #tpu.pipeline_mode<synchronous>, transform_indices = @transform_4, window_bounds = array<i64: 128, 256>}, {pipeline_mode = #tpu.pipeline_mode<synchronous>, transform_indices = @transform_5, window_bounds = array<i64: 1, 256>}, {pipeline_mode = #tpu.pipeline_mode<synchronous>, transform_indices = @transform_6, window_bounds = array<i64: 128, 128>}, {pipeline_mode = #tpu.pipeline_mode<synchronous>, transform_indices = @transform_7, window_bounds = array<i64: 1, 128>}, {pipeline_mode = #tpu.pipeline_mode<synchronous>, transform_indices = @transform_8, window_bounds = array<i64: 128, 128>}, {pipeline_mode = #tpu.pipeline_mode<synchronous>, transform_indices = @transform_9, window_bounds = array<i64: 1, 128>}, {transform_indices = @transform_10, window_bounds = array<i64: 8, 128>}, {transform_indices = @transform_11, window_bounds = array<i64: 8, 256>}]} {
    %c0 = arith.constant 0 : index
    %c0_0 = arith.constant 0 : index
    %0 = vector.load %arg1[%c0, %c0_0] : memref<8x128xf32, #tpu.memory_space<vmem>>, vector<8x128xf32>
    %c0_1 = arith.constant 0 : index
    %c0_2 = arith.constant 0 : index
    %1 = vector.load %arg3[%c0_1, %c0_2] : memref<128x128xf32, #tpu.memory_space<vmem>>, vector<128x128xf32>
    %cst = arith.constant dense<0.000000e+00> : vector<8x128xf32>
    %2 = tpu.matmul %0, %1, %cst {dimension_numbers = #tpu.dot_dimension_numbers<[1], [0], [0], [1], [0, 0, 1, 1], [], []>} : vector<8x128xf32>, vector<128x128xf32>, vector<8x128xf32> -> vector<8x128xf32>
    %c0_3 = arith.constant 0 : index
    %c0_4 = arith.constant 0 : index
    %3 = vector.load %arg4[%c0_3, %c0_4] : memref<1x128xf32, #tpu.memory_space<vmem>>, vector<1x128xf32>
    %4 = vector.broadcast %3 : vector<1x128xf32> to vector<8x128xf32>
    %5 = arith.addf %2, %4 : vector<8x128xf32>
    %cst_5 = arith.constant 0.000000e+00 : f32
    %6 = vector.broadcast %cst_5 : f32 to vector<8x128xf32>
    %7 = arith.maximumf %5, %6 : vector<8x128xf32>
    %c0_6 = arith.constant 0 : index
    %c0_7 = arith.constant 0 : index
    %8 = vector.load %arg5[%c0_6, %c0_7] : memref<128x256xf32, #tpu.memory_space<vmem>>, vector<128x256xf32>
    %cst_8 = arith.constant dense<0.000000e+00> : vector<8x256xf32>
    %9 = tpu.matmul %7, %8, %cst_8 {dimension_numbers = #tpu.dot_dimension_numbers<[1], [0], [0], [1], [0, 0, 1, 1], [], []>} : vector<8x128xf32>, vector<128x256xf32>, vector<8x256xf32> -> vector<8x256xf32>
    %c0_9 = arith.constant 0 : index
    %c0_10 = arith.constant 0 : index
    %10 = vector.load %arg6[%c0_9, %c0_10] : memref<1x256xf32, #tpu.memory_space<vmem>>, vector<1x256xf32>
    %11 = vector.broadcast %10 : vector<1x256xf32> to vector<8x256xf32>
    %12 = arith.addf %9, %11 : vector<8x256xf32>
    %13 = vector.extract_strided_slice %12 {offsets = [0, 0], sizes = [8, 128], strides = [1, 1]} : vector<8x256xf32> to vector<8x128xf32>
    %14 = vector.extract_strided_slice %12 {offsets = [0, 128], sizes = [8, 128], strides = [1, 1]} : vector<8x256xf32> to vector<8x128xf32>
    %c0_11 = arith.constant 0 : index
    %c0_12 = arith.constant 0 : index
    %15 = vector.load %arg2[%c0_11, %c0_12] : memref<8x128xf32, #tpu.memory_space<vmem>>, vector<8x128xf32>
    %16 = arith.mulf %14, %15 : vector<8x128xf32>
    %17 = arith.addf %13, %16 : vector<8x128xf32>
    %c0_13 = arith.constant 0 : index
    %c0_14 = arith.constant 0 : index
    %18 = vector.load %arg7[%c0_13, %c0_14] : memref<128x128xf32, #tpu.memory_space<vmem>>, vector<128x128xf32>
    %cst_15 = arith.constant dense<0.000000e+00> : vector<8x128xf32>
    %19 = tpu.matmul %17, %18, %cst_15 {dimension_numbers = #tpu.dot_dimension_numbers<[1], [0], [0], [1], [0, 0, 1, 1], [], []>} : vector<8x128xf32>, vector<128x128xf32>, vector<8x128xf32> -> vector<8x128xf32>
    %c0_16 = arith.constant 0 : index
    %c0_17 = arith.constant 0 : index
    %20 = vector.load %arg8[%c0_16, %c0_17] : memref<1x128xf32, #tpu.memory_space<vmem>>, vector<1x128xf32>
    %21 = vector.broadcast %20 : vector<1x128xf32> to vector<8x128xf32>
    %22 = arith.addf %19, %21 : vector<8x128xf32>
    %cst_18 = arith.constant 0.000000e+00 : f32
    %23 = vector.broadcast %cst_18 : f32 to vector<8x128xf32>
    %24 = arith.maximumf %22, %23 : vector<8x128xf32>
    %c0_19 = arith.constant 0 : index
    %c0_20 = arith.constant 0 : index
    %25 = vector.load %arg9[%c0_19, %c0_20] : memref<128x128xf32, #tpu.memory_space<vmem>>, vector<128x128xf32>
    %cst_21 = arith.constant dense<0.000000e+00> : vector<8x128xf32>
    %26 = tpu.matmul %24, %25, %cst_21 {dimension_numbers = #tpu.dot_dimension_numbers<[1], [0], [0], [1], [0, 0, 1, 1], [], []>} : vector<8x128xf32>, vector<128x128xf32>, vector<8x128xf32> -> vector<8x128xf32>
    %c0_22 = arith.constant 0 : index
    %c0_23 = arith.constant 0 : index
    %27 = vector.load %arg10[%c0_22, %c0_23] : memref<1x128xf32, #tpu.memory_space<vmem>>, vector<1x128xf32>
    %28 = vector.broadcast %27 : vector<1x128xf32> to vector<8x128xf32>
    %29 = arith.addf %26, %28 : vector<8x128xf32>
    %30 = arith.negf %29 : vector<8x128xf32>
    %31 = math.exp %30 : vector<8x128xf32>
    %cst_24 = arith.constant 1.000000e+00 : f32
    %32 = vector.broadcast %cst_24 : f32 to vector<8x128xf32>
    %33 = arith.addf %32, %31 : vector<8x128xf32>
    %34 = arith.divf %32, %33 : vector<8x128xf32>
    %c0_25 = arith.constant 0 : index
    %c0_26 = arith.constant 0 : index
    %35 = vector.load %arg11[%c0_25, %c0_26] : memref<8x128xf32, #tpu.memory_space<vmem>>, vector<8x128xf32>
    tpu.vector_store %arg11[%c0_25, %c0_26], %34 {strides = array<i32>} : memref<8x128xf32, #tpu.memory_space<vmem>>, vector<8x128xf32>,
    %c0_27 = arith.constant 0 : index
    %c0_28 = arith.constant 0 : index
    %36 = vector.load %arg12[%c0_27, %c0_28] : memref<8x256xf32, #tpu.memory_space<vmem>>, vector<8x256xf32>
    tpu.vector_store %arg12[%c0_27, %c0_28], %12 {strides = array<i32>} : memref<8x256xf32, #tpu.memory_space<vmem>>, vector<8x256xf32>,
    return
  }
  func.func @transform_0(%arg0: i32) -> (i32, i32) {
    %c0_i32 = arith.constant 0 : i32
    %c0_i32_0 = arith.constant 0 : i32
    return %arg0, %c0_i32 : i32, i32
  }
  func.func @transform_1(%arg0: i32) -> (i32, i32) {
    %c0_i32 = arith.constant 0 : i32
    %c0_i32_0 = arith.constant 0 : i32
    return %arg0, %c0_i32 : i32, i32
  }
  func.func @transform_2(%arg0: i32) -> (i32, i32) {
    %c0_i32 = arith.constant 0 : i32
    %c0_i32_0 = arith.constant 0 : i32
    %c0_i32_1 = arith.constant 0 : i32
    return %c0_i32, %c0_i32_0 : i32, i32
  }
  func.func @transform_3(%arg0: i32) -> (i32, i32) {
    %c0_i32 = arith.constant 0 : i32
    %c0_i32_0 = arith.constant 0 : i32
    %c0_i32_1 = arith.constant 0 : i32
    return %c0_i32, %c0_i32_0 : i32, i32
  }
  func.func @transform_4(%arg0: i32) -> (i32, i32) {
    %c0_i32 = arith.constant 0 : i32
    %c0_i32_0 = arith.constant 0 : i32
    %c0_i32_1 = arith.constant 0 : i32
    return %c0_i32, %c0_i32_0 : i32, i32
  }
  func.func @transform_5(%arg0: i32) -> (i32, i32) {
    %c0_i32 = arith.constant 0 : i32
    %c0_i32_0 = arith.constant 0 : i32
    %c0_i32_1 = arith.constant 0 : i32
    return %c0_i32, %c0_i32_0 : i32, i32
  }
  func.func @transform_6(%arg0: i32) -> (i32, i32) {
    %c0_i32 = arith.constant 0 : i32
    %c0_i32_0 = arith.constant 0 : i32
    %c0_i32_1 = arith.constant 0 : i32
    return %c0_i32, %c0_i32_0 : i32, i32
  }
  func.func @transform_7(%arg0: i32) -> (i32, i32) {
    %c0_i32 = arith.constant 0 : i32
    %c0_i32_0 = arith.constant 0 : i32
    %c0_i32_1 = arith.constant 0 : i32
    return %c0_i32, %c0_i32_0 : i32, i32
  }
  func.func @transform_8(%arg0: i32) -> (i32, i32) {
    %c0_i32 = arith.constant 0 : i32
    %c0_i32_0 = arith.constant 0 : i32
    %c0_i32_1 = arith.constant 0 : i32
    return %c0_i32, %c0_i32_0 : i32, i32
  }
  func.func @transform_9(%arg0: i32) -> (i32, i32) {
    %c0_i32 = arith.constant 0 : i32
    %c0_i32_0 = arith.constant 0 : i32
    %c0_i32_1 = arith.constant 0 : i32
    return %c0_i32, %c0_i32_0 : i32, i32
  }
  func.func @transform_10(%arg0: i32) -> (i32, i32) {
    %c0_i32 = arith.constant 0 : i32
    %c0_i32_0 = arith.constant 0 : i32
    return %arg0, %c0_i32 : i32, i32
  }
  func.func @transform_11(%arg0: i32) -> (i32, i32) {
    %c0_i32 = arith.constant 0 : i32
    %c0_i32_0 = arith.constant 0 : i32
    return %arg0, %c0_i32 : i32, i32
  }
}

</mosaic_0001>

<bundles_post_ra>
// kernel: vae_forward.1
= control target key start
LH: loop header
LB: loop body
LE: loop exit
PB: predicated region body
PF: predicated region fallthrough
CT: control target
= control target key end

     0   :  { %v761_v3 = vmov 0.0|0.0   ;;  %vm762_vm0 = vmmov 0   ;;  %v763_v6 = vmov 0.0   ;;  %s1132_s0 = inlined_call_operand.vmem [shape: f32[8,128], index: 0, kind: input, shape index: {}]   ;;  %s1133_s1 = inlined_call_operand.vmem [shape: f32[8,128], index: 1, kind: input, shape index: {}]   ;;  %s1134_s2 = inlined_call_operand.vmem [shape: f32[128,128], index: 2, kind: input, shape index: {}]   ;;  %s1135_s3 = inlined_call_operand.vmem [shape: f32[1,128], index: 3, kind: input, shape index: {}]   ;;  %s1136_s4 = inlined_call_operand.vmem [shape: f32[128,256], index: 4, kind: input, shape index: {}]   ;;  %s1137_s5 = inlined_call_operand.vmem [shape: f32[1,256], index: 5, kind: input, shape index: {}]   ;;  %s1138_s6 = inlined_call_operand.vmem [shape: f32[128,128], index: 6, kind: input, shape index: {}]   ;;  %s1139_s7 = inlined_call_operand.vmem [shape: f32[1,128], index: 7, kind: input, shape index: {}]   ;;  %s1140_s8 = inlined_call_operand.vmem [shape: f32[128,128], index: 8, kind: input, shape index: {}]   ;;  %s1141_s9 = inlined_call_operand.vmem [shape: f32[1,128], index: 9, kind: input, shape index: {}]   ;;  %s1142_s10 = inlined_call_operand.hbm [shape: f32[8,128], index: 10, kind: output, shape index: {0}]   ;;  %s1143_s11 = inlined_call_operand.vmem [shape: f32[8,256], index: 11, kind: output, shape index: {1}]  }
   0x1   :  { %v39_v0 = vld [vmem:[%s1134_s2] sm:$0xff]  ;;  %v40_v1 = vld [vmem:[%s1134_s2 + $0x8] sm:$0xff]  ;;  %v41_v2 = vld [vmem:[%s1134_s2 + $0x10] sm:$0xff]  ;;  %625 = vmatprep.subr.bf16.mxu0 %v761_v3  ;;  %552 = vmatprep.mubr.msk.f32.mxu0 %vm762_vm0, %v763_v6 }
   0x2   :  { %v626_v4 = vpack.c.bf16 %v40_v1, %v39_v0  ;;  %v42_v5 = vld [vmem:[%s1134_s2 + $0x18] sm:$0xff]  ;;  %241 = vmatprep.mubr.f32.mxu1 %v763_v6  ;;  %v43_v8 = vld [vmem:[%s1134_s2 + $0x20] sm:$0xff]  ;;  %v44_v9 = vld [vmem:[%s1134_s2 + $0x28] sm:$0xff] }
   0x3   :  { %v629_v7 = vpack.c.bf16 %v42_v5, %v41_v2  ;;  %v134_v10 = vld [vmem:[%s1136_s4 + $0x8] sm:$0xff]  ;;  %v45_v11 = vld [vmem:[%s1134_s2 + $0x30] sm:$0xff]  ;;  %v46_v12 = vld [vmem:[%s1134_s2 + $0x38] sm:$0xff]  ;;  %v632_v16 = vpack.c.bf16 %v44_v9, %v43_v8 }
   0x4   :  { %627 = vmatpush3.bf16.msra.mxu0 %v626_v4  ;;  %v136_v13 = vld [vmem:[%s1136_s4 + $0x18] sm:$0xff]  ;;  %v133_v14 = vld [vmem:[%s1136_s4] sm:$0xff]  ;;  %v135_v15 = vld [vmem:[%s1136_s4 + $0x10] sm:$0xff]  ;;  %v635_v27 = vpack.c.bf16 %v46_v12, %v45_v11 }
   0x5   :  { %628 = vmatprep.subr.bf16.mxu0 %v761_v3  ;;  %v649_v17 = vpack.c.bf16 %v136_v13, %v134_v10  ;;  %v651_v18 = vpack.c.bf16 %v135_v15, %v133_v14  ;;  %v138_v19 = vld [vmem:[%s1136_s4 + $0x28] sm:$0xff]  ;;  %v140_v20 = vld [vmem:[%s1136_s4 + $0x38] sm:$0xff]  ;;  %v137_v21 = vld [vmem:[%s1136_s4 + $0x20] sm:$0xff] }
   0x6   :  { %v653_v22 = vpack.c.bf16 %v140_v20, %v138_v19  ;;  %v139_v23 = vld [vmem:[%s1136_s4 + $0x30] sm:$0xff]  ;;  %v142_v24 = vld [vmem:[%s1136_s4 + $0x48] sm:$0xff]  ;;  %v144_v25 = vld [vmem:[%s1136_s4 + $0x58] sm:$0xff] }
   0x7   :  { %650 = vmatprep.subr.bf16.mxu1 %v649_v17  ;;  %v655_v26 = vpack.c.bf16 %v139_v23, %v137_v21  ;;  %v47_v28 = vld [vmem:[%s1134_s2 + $0x40] sm:$0xff]  ;;  %v657_v29 = vpack.c.bf16 %v144_v25, %v142_v24  ;;  %v143_v31 = vld [vmem:[%s1136_s4 + $0x50] sm:$0xff]  ;;  %v48_v32 = vld [vmem:[%s1134_s2 + $0x48] sm:$0xff] }
   0x8   :  { %630 = vmatpush3.bf16.msra.mxu0 %v629_v7  ;;  %652 = vmatpush1.bf16.msra.mxu1 %v651_v18  ;;  %v141_v30 = vld [vmem:[%s1136_s4 + $0x40] sm:$0xff]  ;;  %v146_v33 = vld [vmem:[%s1136_s4 + $0x68] sm:$0xff]  ;;  %v148_v34 = vld [vmem:[%s1136_s4 + $0x78] sm:$0xff]  ;;  %v638_v37 = vpack.c.bf16 %v48_v32, %v47_v28 }
   0x9   :  { %631 = vmatprep.subr.bf16.mxu0 %v761_v3  ;;  %654 = vmatprep.subr.bf16.mxu1 %v653_v22  ;;  %v49_v35 = vld [vmem:[%s1134_s2 + $0x50] sm:$0xff]  ;;  %v659_v36 = vpack.c.bf16 %v143_v31, %v141_v30  ;;  %v661_v38 = vpack.c.bf16 %v148_v34, %v146_v33  ;;  %v145_v39 = vld [vmem:[%s1136_s4 + $0x60] sm:$0xff] }
   0xa   :  { %v147_v40 = vld [vmem:[%s1136_s4 + $0x70] sm:$0xff] }
   0xc   :  { %633 = vmatpush3.bf16.msra.mxu0 %v632_v16  ;;  %656 = vmatpush1.bf16.msra.mxu1 %v655_v26 }
   0xd   :  { %634 = vmatprep.subr.bf16.mxu0 %v761_v3  ;;  %658 = vmatprep.subr.bf16.mxu1 %v657_v29 }
  0x10   :  { %636 = vmatpush3.bf16.msra.mxu0 %v635_v27 }
  0x11   :  { %17 = vsyncpa [#allocation3], 0  ;;  %637 = vmatprep.subr.bf16.mxu0 %v761_v3  ;;  %v50_v41 = vld [vmem:[%s1134_s2 + $0x58] sm:$0xff]  ;;  %v150_v42 = vld [vmem:[%s1136_s4 + $0x88] sm:$0xff]  ;;  %660 = vmatpush1.bf16.msra.mxu1 %v659_v36  ;;  %v663_v44 = vpack.c.bf16 %v147_v40, %v145_v39 }
  0x12   :  { %v152_v43 = vld [vmem:[%s1136_s4 + $0x98] sm:$0xff]  ;;  %v641_v45 = vpack.c.bf16 %v50_v41, %v49_v35  ;;  %v51_v46 = vld [vmem:[%s1134_s2 + $0x60] sm:$0xff]  ;;  %662 = vmatprep.subr.bf16.mxu1 %v661_v38  ;;  %v151_v49 = vld [vmem:[%s1136_s4 + $0x90] sm:$0xff] }
  0x13   :  { %v665_v47 = vpack.c.bf16 %v152_v43, %v150_v42  ;;  %v149_v48 = vld [vmem:[%s1136_s4 + $0x80] sm:$0xff]  ;;  %v52_v50 = vld [vmem:[%s1134_s2 + $0x68] sm:$0xff]  ;;  %v156_v52 = vld [vmem:[%s1136_s4 + $0xb8] sm:$0xff] }
  0x14   :  { %639 = vmatpush3.bf16.msra.mxu0 %v638_v37  ;;  %v154_v51 = vld [vmem:[%s1136_s4 + $0xa8] sm:$0xff]  ;;  %v667_v53 = vpack.c.bf16 %v151_v49, %v149_v48  ;;  %v644_v54 = vpack.c.bf16 %v52_v50, %v51_v46  ;;  %v53_v55 = vld [vmem:[%s1134_s2 + $0x70] sm:$0xff]  ;;  %v153_v57 = vld [vmem:[%s1136_s4 + $0xa0] sm:$0xff] }
  0x15   :  { %640 = vmatprep.subr.bf16.mxu0 %v761_v3  ;;  %664 = vmatpush1.bf16.msra.mxu1 %v663_v44  ;;  %v669_v56 = vpack.c.bf16 %v156_v52, %v154_v51  ;;  %v155_v58 = vld [vmem:[%s1136_s4 + $0xb0] sm:$0xff]  ;;  %v54_v59 = vld [vmem:[%s1134_s2 + $0x78] sm:$0xff]  ;;  %v158_v60 = vld [vmem:[%s1136_s4 + $0xc8] sm:$0xff] }
  0x16   :  { %666 = vmatprep.subr.bf16.mxu1 %v665_v47  ;;  %v160_v61 = vld [vmem:[%s1136_s4 + $0xd8] sm:$0xff]  ;;  %v671_v62 = vpack.c.bf16 %v155_v58, %v153_v57  ;;  %v647_v63 = vpack.c.bf16 %v54_v59, %v53_v55  ;;  %v157_v1 = vld [vmem:[%s1136_s4 + $0xc0] sm:$0xff]  ;;  %v159_v2 = vld [vmem:[%s1136_s4 + $0xd0] sm:$0xff] }
  0x17   :  { %v673_v0 = vpack.c.bf16 %v160_v61, %v158_v60  ;;  %v675_v4 = vpack.c.bf16 %v159_v2, %v157_v1  ;;  %v38_v5 = vld [vmem:[%s1132_s0] sm:$0xff]  ;;  %v162_v7 = vld [vmem:[%s1136_s4 + $0xe8] sm:$0xff]  ;;  %v164_v8 = vld [vmem:[%s1136_s4 + $0xf8] sm:$0xff] }
  0x18   :  { %642 = vmatpush3.bf16.msra.mxu0 %v641_v45  ;;  %v677_v9 = vpack.c.bf16 %v164_v8, %v162_v7  ;;  %v161_v10 = vld [vmem:[%s1136_s4 + $0xe0] sm:$0xff]  ;;  %v163_v11 = vld [vmem:[%s1136_s4 + $0xf0] sm:$0xff]  ;;  %v252_v14 = vld [vmem:[%s1138_s6 + $0x8] sm:$0xff] }
  0x19   :  { %643 = vmatprep.subr.bf16.mxu0 %v761_v3  ;;  %668 = vmatpush1.bf16.msra.mxu1 %v667_v53  ;;  %v679_v12 = vpack.c.bf16 %v163_v11, %v161_v10  ;;  %v251_v13 = vld [vmem:[%s1138_s6] sm:$0xff]  ;;  %v253_v15 = vld [vmem:[%s1138_s6 + $0x10] sm:$0xff]  ;;  %v254_v17 = vld [vmem:[%s1138_s6 + $0x18] sm:$0xff] }
  0x1a   :  { %670 = vmatprep.subr.bf16.mxu1 %v669_v56  ;;  %v682_v16 = vpack.c.bf16 %v252_v14, %v251_v13  ;;  %v685_v18 = vpack.c.bf16 %v254_v17, %v253_v15  ;;  %v255_v19 = vld [vmem:[%s1138_s6 + $0x20] sm:$0xff]  ;;  %v256_v20 = vld [vmem:[%s1138_s6 + $0x28] sm:$0xff]  ;;  %v257_v22 = vld [vmem:[%s1138_s6 + $0x30] sm:$0xff] }
  0x1b   :  { %v688_v21 = vpack.c.bf16 %v256_v20, %v255_v19  ;;  %v258_v23 = vld [vmem:[%s1138_s6 + $0x38] sm:$0xff]  ;;  %v259_v25 = vld [vmem:[%s1138_s6 + $0x40] sm:$0xff]  ;;  %v260_v26 = vld [vmem:[%s1138_s6 + $0x48] sm:$0xff] }
  0x1c   :  { %645 = vmatpush3.bf16.msra.mxu0 %v644_v54  ;;  %v691_v24 = vpack.c.bf16 %v258_v23, %v257_v22  ;;  %v694_v27 = vpack.c.bf16 %v260_v26, %v259_v25  ;;  %v261_v28 = vld [vmem:[%s1138_s6 + $0x50] sm:$0xff]  ;;  %v262_v29 = vld [vmem:[%s1138_s6 + $0x58] sm:$0xff]  ;;  %v465_v31 = vld [vmem:[%s1135_s3] ss:$0 sm:$0xff] }
  0x1d   :  { %646 = vmatprep.subr.bf16.mxu0 %v761_v3  ;;  %672 = vmatpush1.bf16.msra.mxu1 %v671_v62  ;;  %v697_v30 = vpack.c.bf16 %v262_v29, %v261_v28  ;;  %v263_v36 = vld [vmem:[%s1138_s6 + $0x60] sm:$0xff]  ;;  %v264_v37 = vld [vmem:[%s1138_s6 + $0x68] sm:$0xff]  ;;  %v265_v39 = vld [vmem:[%s1138_s6 + $0x70] sm:$0xff]  ;;  %v167_v62 = vlaneseq }
  0x1e   :  { %674 = vmatprep.subr.bf16.mxu1 %v673_v0  ;;  %v700_v38 = vpack.c.bf16 %v264_v37, %v263_v36  ;;  %v345_v41 = vld [vmem:[%s1140_s8] sm:$0xff]  ;;  %v346_v42 = vld [vmem:[%s1140_s8 + $0x8] sm:$0xff]  ;;  %v347_v43 = vld [vmem:[%s1140_s8 + $0x10] sm:$0xff] }
  0x1f   :  { %v706_v44 = vpack.c.bf16 %v346_v42, %v345_v41  ;;  %v348_v45 = vld [vmem:[%s1140_s8 + $0x18] sm:$0xff]  ;;  %v349_v47 = vld [vmem:[%s1140_s8 + $0x20] sm:$0xff]  ;;  %v350_v48 = vld [vmem:[%s1140_s8 + $0x28] sm:$0xff] }
  0x20   :  { %648 = vmatpush3.bf16.msra.mxu0 %v647_v63  ;;  %v709_v46 = vpack.c.bf16 %v348_v45, %v347_v43  ;;  %v712_v49 = vpack.c.bf16 %v350_v48, %v349_v47  ;;  %v351_v50 = vld [vmem:[%s1140_s8 + $0x30] sm:$0xff]  ;;  %v352_v51 = vld [vmem:[%s1140_s8 + $0x38] sm:$0xff]  ;;  %v353_v53 = vld [vmem:[%s1140_s8 + $0x40] sm:$0xff]  ;;  %v168_v63 = vshrl.u32 %v167_v62, 7 }
  0x21   :  { %681 = vmatprep.subr.bf16.mxu0 %v761_v3  ;;  %676 = vmatpush1.bf16.msra.mxu1 %v675_v4  ;;  %v715_v52 = vpack.c.bf16 %v352_v51, %v351_v50  ;;  %v354_v54 = vld [vmem:[%s1140_s8 + $0x48] sm:$0xff]  ;;  %v355_v56 = vld [vmem:[%s1140_s8 + $0x50] sm:$0xff]  ;;  %v356_v57 = vld [vmem:[%s1140_s8 + $0x58] sm:$0xff] }
  0x22   :  { %678 = vmatprep.subr.bf16.mxu1 %v677_v9  ;;  %v718_v55 = vpack.c.bf16 %v354_v54, %v353_v53  ;;  %v721_v58 = vpack.c.bf16 %v356_v57, %v355_v56  ;;  %v357_v59 = vld [vmem:[%s1140_s8 + $0x60] sm:$0xff]  ;;  %v358_v60 = vld [vmem:[%s1140_s8 + $0x68] sm:$0xff]  ;;  %v169_v0 = vsub.s32 0, %v168_v63  ;;  %v173_v2 = vsub.s32 1, %v168_v63  ;;  %v359_v13 = vld [vmem:[%s1140_s8 + $0x70] sm:$0xff] }
  0x23   :  { %553 = vmatmul.mubr.f32.vlgmr.msra.gmra.mrb[0].mxu0 %v38_v5  ;;  %v724_v61 = vpack.c.bf16 %v358_v60, %v357_v59  ;;  %v165_v1 = vld [vmem:[%s1137_s5] sm:$0x3]  ;;  %v360_v14 = vld [vmem:[%s1140_s8 + $0x78] sm:$0xff]  ;;  %s764_s8 = smov [#allocation2]  }
  0x24   :  { %587 = vmatprep.mubr.msk.f32.mxu0 %vm762_vm0, %v763_v6  ;;  %683 = vmatpush3.bf16.msra.mxu0 %v682_v16  ;;  %v170_v4 = vrot.slane %v165_v1, %v169_v0  ;;  %v174_v5 = vrot.slane %v165_v1, %v173_v2  ;;  %v248_v10 = vld [vmem:[%s1133_s1] sm:$0xff]  ;;  %v727_v15 = vpack.c.bf16 %v360_v14, %v359_v13  ;;  %s453_s23 = sshll.u32 %s764_s8, 4  ;;  %s454_s23 = int_to_ptr.vmem [resolvable:$true] %s453_s23 }
  0x25   :  { %680 = vmatpush1.bf16.msra.mxu1 %v679_v12  ;;  %684 = vmatprep.subr.bf16.mxu0 %v761_v3  ;;  %v466_v16 = vld [vmem:[%s1139_s7] ss:$0 sm:$0xff]  ;;  %s737_s7 = scalar_lea.vmem %s454_s23, 128  ;;  %p742_p1 = scmp.lt.s32.totalorder %s454_s23, %s454_s23 }
  0x26   :  { %705 = vmatprep.subr.bf16.mxu1 %v761_v3  ;;  %p738_p0 = scmp.ne.s32.totalorder %s454_s23, %s737_s7  ;;  %p743_p2 = scmp.lt.s32.totalorder %s737_s7, %s737_s7 }
  0x28   :  { %686 = vmatpush3.bf16.msra.mxu0 %v685_v18  ;;  %p744_p3 = por %p743_p2, %p742_p1 }
  0x29   :  { %687 = vmatprep.subr.bf16.mxu0 %v761_v3 }
  0x2a   :  { %p745_p4 = pnand %p744_p3, %p738_p0 }
  0x2c   :  { %689 = vmatpush3.bf16.msra.mxu0 %v688_v21  ;;  %v467_v21 = vld [vmem:[%s1141_s9] ss:$0 sm:$0xff] }
  0x2d   :  { %690 = vmatprep.subr.bf16.mxu0 %v761_v3 }
  0x30   :  { %692 = vmatpush3.bf16.msra.mxu0 %v691_v24 }
  0x31   :  { %693 = vmatprep.subr.bf16.mxu0 %v761_v3 }
  0x34   :  { %695 = vmatpush3.bf16.msra.mxu0 %v694_v27 }
  0x35   :  { %696 = vmatprep.subr.bf16.mxu0 %v761_v3 }
  0x38   :  { %698 = vmatpush3.bf16.msra.mxu0 %v697_v30 }
  0x39   :  { %699 = vmatprep.subr.bf16.mxu0 %v761_v3 }
  0x3c   :  { %701 = vmatpush3.bf16.msra.mxu0 %v700_v38 }
  0x3d   :  { %702 = vmatprep.subr.bf16.mxu0 %v761_v3 }
  0xf6   :  { %v128_v32 = vpop.f32.mrb[0].mxu0 }
  0xf7   :  { %v129_v33 = vadd.f32 %v465_v31, %v128_v32  ;;  %v554_v34 = vpop.f32.mrb[1].mxu0 }
  0xf9   :  { %v132_v35 = vmax.f32 %v129_v33, 0.0 }
  0xfb   :  { %242 = vmatmul.mubr.f32.vlgmr.msra.gmra.mrb[0].mxu1 %v132_v35 }
  0xfc   :  { %622 = vmatprep.mubr.msk.f32.mxu1 %vm762_vm0, %v763_v6  ;;  %v266_v6 = vld [vmem:[%s1138_s6 + $0x78] sm:$0xff]  ;;  %707 = vmatpush3.bf16.msra.mxu1 %v706_v44 }
  0xfd   :  { %v703_v40 = vpack.c.bf16 %v266_v6, %v265_v39  ;;  %708 = vmatprep.subr.bf16.mxu1 %v761_v3 }
  0xff   :  { %704 = vmatpush3.bf16.msra.mxu0 %v703_v40 }
 0x100   :  { %710 = vmatpush3.bf16.msra.mxu1 %v709_v46 }
 0x101   :  { %711 = vmatprep.subr.bf16.mxu1 %v761_v3 }
 0x104   :  { %713 = vmatpush3.bf16.msra.mxu1 %v712_v49 }
 0x105   :  { %714 = vmatprep.subr.bf16.mxu1 %v761_v3 }
 0x108   :  { %716 = vmatpush3.bf16.msra.mxu1 %v715_v52 }
 0x109   :  { %717 = vmatprep.subr.bf16.mxu1 %v761_v3 }
 0x10c   :  { %719 = vmatpush3.bf16.msra.mxu1 %v718_v55 }
 0x10d   :  { %720 = vmatprep.subr.bf16.mxu1 %v761_v3 }
 0x110   :  { %722 = vmatpush3.bf16.msra.mxu1 %v721_v58 }
 0x111   :  { %723 = vmatprep.subr.bf16.mxu1 %v761_v3 }
 0x114   :  { %725 = vmatpush3.bf16.msra.mxu1 %v724_v61 }
 0x115   :  { %726 = vmatprep.subr.bf16.mxu1 %v761_v3 }
 0x118   :  { %728 = vmatpush3.bf16.msra.mxu1 %v727_v15 }
 0x1ce   :  { %v243_v7 = vpop.f32.mrb[0].mxu1 }
 0x1cf   :  { %v244_v8 = vadd.f32 %v243_v7, %v170_v4  ;;  %v245_v9 = vpop.f32.mrb[1].mxu1 }
 0x1d0   :  { %v246_v11 = vadd.f32 %v245_v9, %v174_v5 }
 0x1d1   :  { %445 = vst [vmem:[%s1143_s11] sm:$0xff] %v244_v8 }
 0x1d2   :  { %v249_v3 = vmul.f32 %v248_v10, %v246_v11  ;;  %446 = vst [vmem:[%s1143_s11 + $0x8] sm:$0xff] %v246_v11 }
 0x1d4   :  { %v250_v12 = vadd.f32 %v249_v3, %v244_v8 }
 0x1d6   :  { %588 = vmatmul.mubr.f32.vlgmr.msra.gmra.mrb[2].mxu0 %v250_v12 }
 0x2a9   :  { %v340_v17 = vpop.f32.mrb[2].mxu0 }
 0x2aa   :  { %v341_v18 = vadd.f32 %v466_v16, %v340_v17  ;;  %v589_v19 = vpop.f32.mrb[3].mxu0 }
 0x2ac   :  { %v344_v20 = vmax.f32 %v341_v18, 0.0 }
 0x2ae   :  { %623 = vmatmul.mubr.f32.vlgmr.msra.gmra.mrb[2].mxu1 %v344_v20 }
 0x381   :  { %v434_v22 = vpop.f32.mrb[2].mxu1 }
 0x382   :  { %v435_v23 = vadd.f32 %v467_v21, %v434_v22  ;;  %v624_v24 = vpop.f32.mrb[3].mxu1 }
 0x384   :  { %v468_v25 = vmul.f32 -1.442695, %v435_v23 }
 0x386   :  { %733 = vpow2.f32 %v468_v25 }
 0x390   :  { %v734_v26 = vpop.eup %733 }
 0x391   :  { %v441_v27 = vadd.f32 1.0, %v734_v26 }
 0x393   :  { %735 = vrcp.f32 %v441_v27 }
 0x39d   :  { %v736_v28 = vpop.eup %735 }
 0x39e   :  { %444 = vst [vmem:[#allocation2] sm:$0xff] %v736_v28 }
 0x39f   :  { %748 = shalt.err (!%p745_p4)
}
 0x3a0   :  { %s749_s4 = scalar_lea.hbm %s1142_s10, 128 }
 0x3a1   :  { %p750_p5 = scmp.ne.s32.totalorder %s1142_s10, %s749_s4  ;;  %p753_p6 = scmp.lt.u32.totalorder %s749_s4, %s1142_s10 }
 0x3a3   :  { %p755_p7 = pnand %p753_p6, %p750_p5 }
 0x3a5   :  { %758 = shalt.err (!%p755_p7)
}
 0x3a6   :  { %456 = dma.vmem_to_hbm [thread:$0]  %s454_s23, 128, %s1142_s10, [#allocation3]  }
 0x3a7   :  { %759 = dma.done.wait [#allocation3], 128  }
 0x3a8   :  { %760 = vsyncadd [#allocation3], 4294967168 }
 0x3a9   :  { %464 = vsyncpa [#allocation3], 1 }

</bundles_post_ra>
